<compile_context>
chip_gen: v6e
topology: v6e:2x2x1
jax: 0.10.0
libtpu: 0.0.40
codegen_flags: <defaults>
</compile_context>

<pallas_src>
import jax
import jax.numpy as jnp
from jax import lax
from jax.experimental import pallas as pl
from jax.experimental.pallas import tpu as pltpu


def patch_embed_kernel(x_ref, w_ref, b_ref, o_ref):
    # x_ref: (1, C, TT) native-layout slab; w_ref: (C, E); b_ref: (1, E) f32;
    # o_ref: (1, TT, E).
    x_ct = x_ref[0]                                        # (C, TT)
    acc = lax.dot_general(                                 # contract over C (LHS dim 0)
        x_ct, w_ref[...],
        dimension_numbers=(((0,), (0,)), ((), ())),
        preferred_element_type=jnp.float32)                # (TT, E) f32 accumulate
    o_ref[0] = (acc + b_ref[...]).astype(o_ref.dtype)


def _round_up(x, m):
    return ((x + m - 1) // m) * m


def _vmem_budget_and_limit():
    """(tiling budget, vmem_limit_bytes) scaled to this generation's VMEM."""
    cap = 64 * 1024 * 1024
    try:
        cap = int(pltpu.get_tpu_info().vmem_capacity_bytes)
    except Exception:
        pass
    if cap >= 128 * 1024 * 1024:                              # v5e / v6e
        return 48 * 1024 * 1024, 96 * 1024 * 1024
    return 16 * 1024 * 1024, 32 * 1024 * 1024                 # v7x (64 MiB physical)


def _resident_spec(block_shape, index_map):
    """BlockSpec for a constant-index block: fetched once, kept single-buffered."""
    try:
        return pl.BlockSpec(block_shape, index_map, pipeline_mode=pl.Buffered(1))
    except Exception:   # older jax without pipeline_mode / Buffered(1) support
        return pl.BlockSpec(block_shape, index_map)


def _pick_tt(B, T, C, E_out, in_itemsize, out_itemsize, vmem_budget_bytes):
    """Token-tile length along T: multiple of 128 (or full T), VMEM-budgeted,
    capped at 1024 rows, and small enough that the grid has ~8 steps."""
    if T <= 128:
        return T
    resident = C * E_out * in_itemsize + E_out * 4            # single-buffered W + bias
    per_tok = 2 * (C * in_itemsize + E_out * out_itemsize)    # double-buffered x/out tiles
    tt = max(vmem_budget_bytes - resident, 0) // max(per_tok, 1)
    tt = max(128, (tt // 128) * 128)
    tt = min(tt, 1024)                                        # no BW win past ~1024 rows
    target_steps = 8                                          # pipeline depth + megacore
    if B * pl.cdiv(T, tt) < target_steps:
        tt_steps = _round_up(pl.cdiv(T, pl.cdiv(target_steps, B)), 128)
        tt = max(128, min(tt, tt_steps))
    return T if tt >= T else tt


def patch_embed(x, weight, bias, *, tt=None, compute_dtype=None, out_dtype=None):
    """PatchEmbed forward.

    x: (B, C, T); weight: (E, C) (= squeezed Conv1d kernel_size=1 weight);
    bias: (E,).  Returns (B, T, E) == proj -> permute(0, 2, 1) -> Identity.

    compute_dtype: optional narrow MXU input dtype (e.g. jnp.bfloat16 on
    v6e/v7x; most beneficial when x already arrives narrow).  Default keeps
    f32 parity with the PyTorch module.  out_dtype defaults to x.dtype.
    """
    B, C, T = x.shape
    E = weight.shape[0]
    if out_dtype is None:
        out_dtype = x.dtype

    wt = jnp.transpose(weight)                                # (C, E) — tiny, one-off
    if compute_dtype is not None:
        x = x.astype(compute_dtype)
        wt = wt.astype(compute_dtype)
    elif wt.dtype != x.dtype:
        wt = wt.astype(x.dtype)

    # Pad only when E is tiny (lane-sparse stores); otherwise write E exactly once.
    E_out = E if E >= 128 else 128
    if E_out != E:
        wt = jnp.pad(wt, ((0, 0), (0, E_out - E)))
        bias = jnp.pad(bias, (0, E_out - E))
    b2 = bias.reshape(1, E_out).astype(jnp.float32)           # f32 bias after f32 accum

    in_itemsize = jnp.dtype(x.dtype).itemsize
    out_itemsize = jnp.dtype(out_dtype).itemsize
    vmem_budget, vmem_limit = _vmem_budget_and_limit()
    if tt is None:
        tt = _pick_tt(B, T, C, E_out, in_itemsize, out_itemsize, vmem_budget)
    else:
        tt = int(tt)
        tt = T if tt >= T else max(128, (tt // 128) * 128)    # lane-dim alignment

    grid = (B, pl.cdiv(T, tt))

    cost = pl.CostEstimate(
        flops=2 * B * T * C * E_out,
        transcendentals=0,
        bytes_accessed=(B * C * T * in_itemsize              # x, read once (fused relayout)
                        + C * E_out * in_itemsize            # resident weight
                        + E_out * 4                          # bias
                        + B * T * E_out * out_itemsize),     # output, written once
    )

    out = pl.pallas_call(
        patch_embed_kernel,
        out_shape=jax.ShapeDtypeStruct((B, T, E_out), out_dtype),
        grid=grid,
        in_specs=[
            pl.BlockSpec((1, C, tt), lambda b, t: (b, 0, t)),   # streamed native-layout x
            _resident_spec((C, E_out), lambda b, t: (0, 0)),    # resident weight
            _resident_spec((1, E_out), lambda b, t: (0, 0)),    # resident bias
        ],
        out_specs=pl.BlockSpec((1, tt, E_out), lambda b, t: (b, t, 0)),
        compiler_params=pltpu.CompilerParams(
            dimension_semantics=("parallel", "parallel"),
            vmem_limit_bytes=vmem_limit,
        ),
        cost_estimate=cost,
    )(x, wt, b2)

    if E_out != E:
        out = out[:, :, :E]
    # norm_layer=None in the module -> nn.Identity(): nothing to do.
    return out


if __name__ == "__main__":
    key = jax.random.PRNGKey(0)

    def run_case(B, C, T, E, *, tt=None, compute_dtype=None, x_dtype=jnp.float32,
                 atol=1e-4, rtol=1e-4):
        kx, kw, kb = jax.random.split(jax.random.fold_in(key, B * 1000 + T), 3)
        x = jax.random.normal(kx, (B, C, T), dtype=jnp.float32)
        weight = jax.random.normal(kw, (E, C), dtype=jnp.float32) * 0.02
        bias = jax.random.normal(kb, (E,), dtype=jnp.float32) * 0.02
        out = jax.block_until_ready(
            patch_embed(x.astype(x_dtype), weight, bias, tt=tt,
                        compute_dtype=compute_dtype))
        ref = jnp.einsum("bct,ec->bte", x, weight) + bias[None, None, :]
        assert out.shape == (B, T, E), out.shape
        err = float(jnp.max(jnp.abs(out.astype(jnp.float32) - ref)))
        assert err <= atol + rtol * float(jnp.max(jnp.abs(ref))), err

    # f32 parity, E a multiple of 128 (no pad / no slice), 8-step grid over (B, T-tiles).
    run_case(B=2, C=16, T=512, E=128)
    # f32 parity, tiny E -> lane-dense pad + slice-back path, manual tt override.
    run_case(B=1, C=8, T=256, E=32, tt=128)
    # bf16 MXU inputs + bf16 output (v6e/v7x fast path); looser tolerance vs f32 reference.
    run_case(B=2, C=16, T=256, E=128, compute_dtype=jnp.bfloat16,
             x_dtype=jnp.bfloat16, atol=5e-2, rtol=5e-2)

    print("KERNEL_OK")
</pallas_src>

<mosaic_0001>
module attributes {stable_mosaic.version = 11 : i64} {
  func.func @patch_embed_kernel(%arg0: i32, %arg1: i32, %arg2: memref<1x16x128xf32, #tpu.memory_space<vmem>>, %arg3: memref<16x128xf32, #tpu.memory_space<vmem>>, %arg4: memref<1x128xf32, #tpu.memory_space<vmem>>, %arg5: memref<1x128x128xf32, #tpu.memory_space<vmem>>) attributes {dimension_semantics = [#tpu.dimension_semantics<parallel>, #tpu.dimension_semantics<parallel>], iteration_bounds = array<i64: 2, 4>, scalar_prefetch = 0 : i64, scratch_operands = 0 : i64, tpu.core_type = #tpu.core_type<tc>, window_params = [{transform_indices = @transform_0, window_bounds = array<i64: 1, 16, 128>}, {pipeline_mode = #tpu.pipeline_mode<synchronous>, transform_indices = @transform_1, window_bounds = array<i64: 16, 128>}, {pipeline_mode = #tpu.pipeline_mode<synchronous>, transform_indices = @transform_2, window_bounds = array<i64: 1, 128>}, {transform_indices = @transform_3, window_bounds = array<i64: 1, 128, 128>}]} {
    %c0 = arith.constant 0 : index
    %c0_0 = arith.constant 0 : index
    %c0_1 = arith.constant 0 : index
    %0 = vector.load %arg2[%c0, %c0_0, %c0_1] : memref<1x16x128xf32, #tpu.memory_space<vmem>>, vector<1x16x128xf32>
    %1 = vector.shape_cast %0 : vector<1x16x128xf32> to vector<16x128xf32>
    %c0_2 = arith.constant 0 : index
    %c0_3 = arith.constant 0 : index
    %2 = vector.load %arg3[%c0_2, %c0_3] : memref<16x128xf32, #tpu.memory_space<vmem>>, vector<16x128xf32>
    %cst = arith.constant dense<0.000000e+00> : vector<128x128xf32>
    %3 = tpu.matmul %1, %2, %cst {dimension_numbers = #tpu.dot_dimension_numbers<[0], [0], [1], [1], [0, 1, 1, 1], [], []>} : vector<16x128xf32>, vector<16x128xf32>, vector<128x128xf32> -> vector<128x128xf32>
    %c0_4 = arith.constant 0 : index
    %c0_5 = arith.constant 0 : index
    %4 = vector.load %arg4[%c0_4, %c0_5] : memref<1x128xf32, #tpu.memory_space<vmem>>, vector<1x128xf32>
    %5 = vector.broadcast %4 : vector<1x128xf32> to vector<128x128xf32>
    %6 = arith.addf %3, %5 : vector<128x128xf32>
    %c0_6 = arith.constant 0 : index
    %c0_7 = arith.constant 0 : index
    %c0_8 = arith.constant 0 : index
    %7 = vector.load %arg5[%c0_6, %c0_7, %c0_8] : memref<1x128x128xf32, #tpu.memory_space<vmem>>, vector<1x128x128xf32>
    %8 = vector.shape_cast %7 : vector<1x128x128xf32> to vector<128x128xf32>
    %9 = vector.shape_cast %6 : vector<128x128xf32> to vector<1x128x128xf32>
    tpu.vector_store %arg5[%c0_6, %c0_7, %c0_8], %9 {strides = array<i32>} : memref<1x128x128xf32, #tpu.memory_space<vmem>>, vector<1x128x128xf32>,
    return
  }
  func.func @transform_0(%arg0: i32, %arg1: i32) -> (i32, i32, i32) {
    %c0_i32 = arith.constant 0 : i32
    %c0_i32_0 = arith.constant 0 : i32
    return %arg0, %c0_i32, %arg1 : i32, i32, i32
  }
  func.func @transform_1(%arg0: i32, %arg1: i32) -> (i32, i32) {
    %c0_i32 = arith.constant 0 : i32
    %c0_i32_0 = arith.constant 0 : i32
    %c0_i32_1 = arith.constant 0 : i32
    return %c0_i32, %c0_i32_0 : i32, i32
  }
  func.func @transform_2(%arg0: i32, %arg1: i32) -> (i32, i32) {
    %c0_i32 = arith.constant 0 : i32
    %c0_i32_0 = arith.constant 0 : i32
    %c0_i32_1 = arith.constant 0 : i32
    return %c0_i32, %c0_i32_0 : i32, i32
  }
  func.func @transform_3(%arg0: i32, %arg1: i32) -> (i32, i32, i32) {
    %c0_i32 = arith.constant 0 : i32
    %c0_i32_0 = arith.constant 0 : i32
    return %arg0, %arg1, %c0_i32 : i32, i32, i32
  }
}

</mosaic_0001>

<bundles_post_ra>
// kernel: tpu_custom_call.1
= control target key start
LH: loop header
LB: loop body
LE: loop exit
PB: predicated region body
PF: predicated region fallthrough
CT: control target
= control target key end

     0   :  { %s1198_s0 = inlined_call_operand.hbm [shape: f32[2,16,512], index: 0, kind: input, shape index: {}]   ;;  %s1199_s1 = inlined_call_operand.hbm [shape: f32[16,128], index: 1, kind: input, shape index: {}]   ;;  %s1200_s2 = inlined_call_operand.vmem [shape: f32[1,128], index: 2, kind: input, shape index: {}]   ;;  %s1201_s3 = inlined_call_operand.hbm [shape: f32[2,512,128], index: 3, kind: output, shape index: {}]  }
   0x1   :  { %1211 = sst [smem:[#allocation15_spill]] %s1199_s1 }
   0x2   :  { %8 = vsyncpa [#allocation3], 0 }
   0x3   :  { %10 = vsyncpa [#allocation3 + $0x1], 0 }
   0x4   :  { %11 = vsyncpa [#allocation6], 0 }
   0x5   :  { %12 = vsyncpa [#allocation4], 0 }
   0x6   :  { %14 = vsyncpa [#allocation4 + $0x1], 0  ;;  %s954_s12 = smov 0   ;;  %s956_s13 = smov 0  }
   0x7   :  { %s958_s14 = smov 0   ;;  %s960_s15 = smov 0  }
   0x8   :  { %s962_s16 = smov 0   ;;  %s964_s17 = smov 0  }
   0x9   :  { %s966_s18 = smov 0   ;;  %s968_s19 = smov 0  }
   0xa LB: > { %1212 = sst [smem:[#allocation11_spill]] %s896_s12  ;;  %s590_s20 = sadd.s32 4294967295, %s924_s19   ;;  %s924_s19 = sphi %s968_s19, %s20_s19   ;;  %s920_s18 = sphi %s966_s18, %s1240_s18   ;;  %s916_s17 = sphi %s964_s17, %s1235_s17   ;;  %s912_s16 = sphi %s962_s16, %s1239_s16   ;;  %s908_s15 = sphi %s960_s15, %s1234_s15   ;;  %s904_s14 = sphi %s958_s14, %s1238_s14   ;;  %s900_s13 = sphi %s956_s13, %s1237_s13   ;;  %s896_s12 = sphi %s954_s12, %s1236_s12  }
   0xb   : > { %1213 = sst [smem:[#allocation12_spill]] %s916_s17  ;;  %s591_s21 = sadd.s32 4294967294, %s924_s19  }
   0xc   : > { %p48_p0 = scmp.ne.s32.totalorder %s904_s14, %s900_s13  ;;  %p49_p1 = scmp.eq.s32.totalorder %s924_s19, 0 }
   0xd   : > { %p54_p2 = scmp.ne.s32.totalorder %s900_s13, %s896_s12  ;;  %p1002_p3 = scmp.eq.s32.totalorder %s590_s20, 0 }
   0xe   : > { %p122_p4 = scmp.eq.s32.totalorder %s590_s20, 7  ;;  %p1006_p5 = por %p49_p1, %p48_p0 }
   0xf   : > { %p128_p6 = scmp.eq.s32.totalorder %s591_s21, 7  ;;  %p1012_p7 = por %p1002_p3, %p54_p2 }
  0x10   : > { %p1016_p8 = por %p122_p4, %p48_p0  ;;  %p592_p10 = scmp.ge.s32.totalorder %s924_s19, 1 }
  0x11   : > { %s1216_s25 = scalar_select %p1012_p7, 1, 0 }
  0x12   : > { %s1217_s26 = scalar_select %p1016_p8, 1, 0 }
  0x13   : > { %p1020_p9 = por %p128_p6, %p54_p2  ;;  %p135_p11 = scmp.lt.s32.totalorder %s924_s19, 9 }
  0x14   : > { %s926_s29 = smov [#allocation5]   ;;  %p696_p0 = scmp.lt.s32.totalorder %s924_s19, 8 }
  0x15   : > { %s1218_s27 = scalar_select %p1020_p9, 1, 0 }
  0x16   : > { %p1026_p12 = pnand %p592_p10, %p135_p11  ;;  %s147_s30 = sshll.u32 %s926_s29, 4  ;;  %s148_s30 = int_to_ptr.vmem [resolvable:$true] %s147_s30 }
  0x17   : > { %1219 = sst [smem:[#allocation13_spill]] %s1218_s27  ;;  %p1041_p2 = pnand %p696_p0, %p1006_p5 }
  0x18   : > { %s1220_s28 = scalar_select %p1026_p12, 1, 0 }
  0x19   : > { %p683_p13 = pneg %p1026_p12  ;;  %s781_s6 = scalar_lea.vmem %s148_s30, 256 }
  0x1a   : > { %p782_p6 = scmp.ne.s32.totalorder %s148_s30, %s781_s6  ;;  %p789_p9 = scmp.lt.s32.totalorder %s148_s30, %s148_s30 }
  0x1b   : > { %p1035_p1 = pnand %p683_p13, %p1002_p3  ;;  %p790_p8 = scmp.lt.s32.totalorder %s781_s6, %s781_s6 }
  0x1d   : > { %p772_p4 = pneg %p1035_p1  ;;  %p791_p7 = por %p790_p8, %p789_p9 }
  0x1f   : > { %p784_p10 = pnand %p782_p6, %p772_p4 }
  0x21   : > { %p785_p11 = pneg %p784_p10 }
  0x23   : > { %p792_p12 = pnand %p791_p7, %p785_p11 }
  0x25   : > { %795 = shalt.err (!%p792_p12)
}
  0x26   : > { %s1205_s7 = smov 128   ;;  %s1206_s8 = smov 8  }
  0x27   : > { %s1223_s1 = sld [smem:[#allocation15_spill]]  ;;  %s29_s11 = sadd.s32 1, %s916_s17 }
  0x28   : > { %p30_p5 = scmp.ge.s32.totalorder %s29_s11, 4  ;;  %s32_s20 = sadd.s32 1, %s920_s18 }
  0x29   : > { %s164_s21 = sand.u32 1, %s904_s14   ;;  %s596_s24 = sshll.u32 %s920_s18, 3 }
  0x2a   : > { %s1242_s11 = smov (%p30_p5, %s29_s11), 0  ;;  %s1244_s20 = smov (!%p30_p5, %s32_s20), %s920_s18 }
  0x2b   : > { %1224 = sst [smem:[#allocation14_spill]] %s1242_s11  ;;  %s37_s29 = ssub.s32 %s916_s17, %s1242_s11 }
  0x2c   : > { %p34_p7 = scmp.ge.s32.totalorder %s1244_s20, 2  ;;  %s595_s4 = sshll.u32 %s164_s21, 4 }
  0x2d   : > { %686 = dma.hbm_to_vmem [thread:$0]  (!%p1035_p1), %s1223_s1, 256, %s148_s30, [#allocation6], %s1205_s7, %s1205_s7, %s1206_s8  }
  0x2e   : > { %s173_s6 = sadd.s32 %s916_s17, %s596_s24  ;;  %s1246_s20 = smov (%p34_p7, %s1244_s20), 0 }
  0x2f   : > { %s597_s9 = sshll.u32 %s173_s6, 7  ;;  %s168_s30 = scalar_lea.vmem [#allocation2], %s595_s4 }
  0x30   : > { %s176_s10 = sshll.u32 %s168_s30, 4  ;;  %s36_s22 = ssub.s32 %s920_s18, %s1246_s20  ;;  %s177_s10 = int_to_ptr.vmem [resolvable:$true] %s176_s10 }
  0x31   : > { %s175_s1 = scalar_lea.hbm %s1198_s0, %s597_s9  ;;  %s38_s27 = sor.u32 %s37_s29, %s36_s22 }
  0x32   : > { %p39_p8 = scmp.eq.s32.totalorder %s38_s27, 0  ;;  %s165_s12 = scalar_lea.sflag [#allocation3], %s164_s21 }
  0x33   : > { %p798_p9 = pneg %p1041_p2  ;;  %s809_s11 = scalar_lea.vmem %s177_s10, 256 }
  0x34   : > { %p810_p12 = scmp.ne.s32.totalorder %s177_s10, %s809_s11  ;;  %s929_s24 = smov [#allocation2]  }
  0x35   : > { %s814_s17 = sshll.u32 %s929_s24, 4  ;;  %s815_s17 = int_to_ptr.vmem [resolvable:$false] %s814_s17 }
  0x36   : > { %p812_p13 = pnand %p810_p12, %p798_p9  ;;  %s816_s4 = scalar_lea.vmem %s815_s17, 512 }
  0x37   : > { %p817_p1 = scmp.lt.s32.totalorder %s177_s10, %s815_s17  ;;  %p818_p4 = scmp.lt.s32.totalorder %s816_s4, %s809_s11 }
  0x38   : > { %p813_p0 = pneg %p812_p13 }
  0x39   : > { %p819_p6 = por %p818_p4, %p817_p1 }
  0x3b   : > { %p820_p10 = pnand %p819_p6, %p813_p0 }
  0x3d   : > { %823 = shalt.err (!%p820_p10)
}
  0x3e   : > { %s930_s7 = smov 512   ;;  %s1225_s22 = smov 8  }
  0x3f   : > { %s1226_s8 = smov 128   ;;  %s1227_s21 = sadd.s32 1, %s904_s14 }
  0x40   : > { %690 = dma.hbm_to_vmem [thread:$0]  (!%p1041_p2), %s175_s1, 256, %s177_s10, %s165_s12, %s930_s7, %s1226_s8, %s1225_s22  }
  0x41   : > { %s1082_s29 = scalar_select %p39_p8, %s904_s14, %s1227_s21  }
  0x42   : > { %p1228_p11 = scmp.ne.s32.totalorder %s1220_s28, 0 }
  0x43   : > { %s1087_s17 = sand.u32 (!%p1228_p11), 1, %s900_s13   ;;  %p1229_p5 = scmp.ne.s32.totalorder (!%p1228_p11), %s1216_s25, 0 }
  0x44   : > { %188 = sbr.rel (%p1228_p11) target bundleno = 473 (0x1d9), region = 32  ;;  %s599_s11 = sshll.u32 (!%p1228_p11), %s1087_s17, 4 }
  0x45   : > { %s191_s5 = scalar_lea.sflag (!%p1228_p11), [#allocation3], %s1087_s17  ;;  %s194_s6 = scalar_lea.vmem (!%p1228_p11), [#allocation2], %s599_s11 }
  0x49   : > { %883 = dma.done.wait (%p1229_p5), %s191_s5, 256  }
  0x4a   : > { %885 = vsyncadd (%p1229_p5), %s191_s5, 4294967040 }
  0x4b   : > { %887 = dma.done.wait (%p1002_p3), [#allocation6], 256  }
  0x4c   : > { %889 = vsyncadd (%p1002_p3), [#allocation6], 4294967040  ;;  %v222_v0 = vld [vmem:[%s194_s6] sm:$0xff]  ;;  %v225_v1 = vld [vmem:[#allocation5 + $0x8] sm:$0xff]  ;;  %vm265_vm0 = vcmask 130048   ;;  %s601_s1 = sshll.u32 %s1087_s17, 7 }
  0x4d   : > { %233 = vxpose.xlu0.b32.start [1/2] (short) %v222_v0, 128  ;;  %643 = vmatprep.subr.mxu0 %v225_v1  ;;  %v224_v2 = vld [vmem:[#allocation5] sm:$0xff]  ;;  %v223_v3 = vld [vmem:[%s194_s6 + $0x8] sm:$0xff]  ;;  %s1119_s25 = scalar_lea.vmem [#allocation7], %s601_s1  ;;  %s620_s27 = sshll.u32 %s908_s15, 4 }
  0x4e   : > { %644 = vmatpush3.msra.mxu0 %v225_v1  ;;  %671 = vmatprep.subr.mxu1 %v225_v1  ;;  %v602_v20 = vld [vmem:[%s1200_s2] ss:$0 sm:$0xff]  ;;  %s621_s28 = sshll.u32 %s912_s16, 6  ;;  %s491_s10 = sshll.u32 %s1119_s25, 4  ;;  %s1143_s10 = int_to_ptr.vmem [resolvable:$true] %s491_s10 }
  0x4f   : > { %645 = vmatprep.subr.mxu0 %v224_v2  ;;  %673 = vmatpush3.msra.mxu1 %v225_v1  ;;  %s488_s9 = sadd.s32 %s621_s28, %s620_s27  ;;  %s476_s15 = scalar_lea.sflag [#allocation4], %s1087_s17 }
  0x50   : > { %646 = vmatpush3.msra.mxu0 %v224_v2  ;;  %672 = vmatprep.subr.mxu1 %v224_v2  ;;  %s622_s30 = sshll.u32 %s488_s9, 7  ;;  %s824_s16 = scalar_lea.vmem %s1143_s10, 2048 }
  0x51   : > { %234 = vxpose.xlu0.b32.end [2/2] (short) %v223_v3, 128  ;;  %674 = vmatpush3.msra.mxu1 %v224_v2  ;;  %s1141_s7 = scalar_lea.hbm %s1201_s3, %s622_s30  ;;  %p825_p3 = scmp.ne.s32.totalorder %s1143_s10, %s824_s16 }
  0x52   : > { %p1230_p2 = scmp.ne.s32.totalorder %s1217_s26, 0  ;;  %s931_s22 = smov [#allocation7]  }
  0x53   : > { %s828_s8 = sshll.u32 %s931_s22, 4  ;;  %s829_s8 = int_to_ptr.vmem [resolvable:$false] %s828_s8 }
  0x54   : > { %p826_p7 = pnand %p825_p3, %p1230_p2  ;;  %s830_s21 = scalar_lea.vmem %s829_s8, 4096 }
  0x55   : > { %p831_p9 = scmp.lt.s32.totalorder %s1143_s10, %s829_s8  ;;  %p832_p12 = scmp.lt.s32.totalorder %s830_s21, %s824_s16 }
  0x56   : > { %p827_p8 = pneg %p826_p7 }
  0x57   : > { %p833_p13 = por %p832_p12, %p831_p9 }
  0x59   : > { %p834_p0 = pnand %p833_p13, %p827_p8 }
  0xc9   : > { %v249_v4 = vpop.trf.xlu0 }
  0xca   : > { %647 = vmatprep.mubr.msk.f32.mxu0 %vm265_vm0, %v249_v4 }
  0xcd   : > { %v250_v5 = vpop.trf.xlu0 }
  0xce   : > { %648 = vmatmul.mubr.msk.f32.vlgmr.msra.gmra.mxu0 %vm265_vm0, %v250_v5 }
  0xd1   : > { %v251_v6 = vpop.trf.xlu0 }
  0xd2   : > { %650 = vmatprep.mubr.msk.f32.mxu0 %vm265_vm0, %v251_v6 }
  0xd5   : > { %v252_v7 = vpop.trf.xlu0 }
  0xd6   : > { %651 = vmatmul.mubr.msk.f32.gmra.mxu0 %vm265_vm0, %v252_v7 }
  0xd9   : > { %v253_v8 = vpop.trf.xlu0 }
  0xda   : > { %653 = vmatprep.mubr.msk.f32.mxu0 %vm265_vm0, %v253_v8 }
  0xdd   : > { %v254_v9 = vpop.trf.xlu0 }
  0xde   : > { %654 = vmatmul.mubr.msk.f32.gmra.mxu0 %vm265_vm0, %v254_v9 }
  0xe1   : > { %v255_v10 = vpop.trf.xlu0 }
  0xe2   : > { %656 = vmatprep.mubr.msk.f32.mxu0 %vm265_vm0, %v255_v10 }
  0xe5   : > { %v256_v11 = vpop.trf.xlu0 }
  0xe6   : > { %657 = vmatmul.mubr.msk.f32.gmra.mxu0 %vm265_vm0, %v256_v11 }
  0xe9   : > { %v257_v12 = vpop.trf.xlu0 }
  0xea   : > { %659 = vmatprep.mubr.msk.f32.mxu1 %vm265_vm0, %v257_v12 }
  0xed   : > { %v258_v13 = vpop.trf.xlu0 }
  0xee   : > { %660 = vmatmul.mubr.msk.f32.vlgmr.msra.gmra.mxu1 %vm265_vm0, %v258_v13 }
  0xf1   : > { %v259_v14 = vpop.trf.xlu0 }
  0xf2   : > { %662 = vmatprep.mubr.msk.f32.mxu1 %vm265_vm0, %v259_v14 }
  0xf5   : > { %v260_v15 = vpop.trf.xlu0 }
  0xf6   : > { %663 = vmatmul.mubr.msk.f32.gmra.mxu1 %vm265_vm0, %v260_v15 }
  0xf9   : > { %v261_v16 = vpop.trf.xlu0 }
  0xfa   : > { %665 = vmatprep.mubr.msk.f32.mxu1 %vm265_vm0, %v261_v16 }
  0xfd   : > { %v262_v17 = vpop.trf.xlu0 }
  0xfe   : > { %666 = vmatmul.mubr.msk.f32.gmra.mxu1 %vm265_vm0, %v262_v17 }
 0x101   : > { %v263_v18 = vpop.trf.xlu0 }
 0x102   : > { %668 = vmatprep.mubr.msk.f32.mxu1 %vm265_vm0, %v263_v18 }
 0x105   : > { %v264_v19 = vpop.trf.xlu0 }
 0x106   : > { %669 = vmatmul.mubr.msk.f32.gmra.mxu1 %vm265_vm0, %v264_v19 }
 0x18e   : > { %v649_v21 = vpop.f32.mrf.mxu0 }
 0x18f   : > { %v386_v22 = vadd.f32 %v649_v21, %v602_v20 }
 0x190   : > { %v380_v23 = vpop.f32.mrf.mxu0 }
 0x191   : > { %460 = vst [vmem:[%s1119_s25 + $0x8] sm:$0xff] %v386_v22  ;;  %v381_v24 = vadd.f32 %v602_v20, %v380_v23 }
 0x193   : > { %459 = vst [vmem:[%s1119_s25] sm:$0xff] %v381_v24 }
 0x196   : > { %v652_v25 = vpop.f32.mrf.mxu0 }
 0x197   : > { %v396_v26 = vadd.f32 %v652_v25, %v602_v20 }
 0x198   : > { %v390_v27 = vpop.f32.mrf.mxu0 }
 0x199   : > { %462 = vst [vmem:[%s1119_s25 + $0x18] sm:$0xff] %v396_v26  ;;  %v391_v28 = vadd.f32 %v602_v20, %v390_v27 }
 0x19b   : > { %461 = vst [vmem:[%s1119_s25 + $0x10] sm:$0xff] %v391_v28 }
 0x19e   : > { %v655_v29 = vpop.f32.mrf.mxu0 }
 0x19f   : > { %v406_v30 = vadd.f32 %v655_v29, %v602_v20 }
 0x1a0   : > { %v400_v31 = vpop.f32.mrf.mxu0 }
 0x1a1   : > { %464 = vst [vmem:[%s1119_s25 + $0x28] sm:$0xff] %v406_v30  ;;  %v401_v32 = vadd.f32 %v602_v20, %v400_v31 }
 0x1a3   : > { %463 = vst [vmem:[%s1119_s25 + $0x20] sm:$0xff] %v401_v32 }
 0x1a6   : > { %v658_v33 = vpop.f32.mrf.mxu0 }
 0x1a7   : > { %v416_v34 = vadd.f32 %v658_v33, %v602_v20 }
 0x1a8   : > { %v410_v35 = vpop.f32.mrf.mxu0 }
 0x1a9   : > { %466 = vst [vmem:[%s1119_s25 + $0x38] sm:$0xff] %v416_v34  ;;  %v411_v36 = vadd.f32 %v602_v20, %v410_v35 }
 0x1ab   : > { %465 = vst [vmem:[%s1119_s25 + $0x30] sm:$0xff] %v411_v36 }
 0x1ae   : > { %v661_v37 = vpop.f32.mrf.mxu1 }
 0x1af   : > { %v426_v38 = vadd.f32 %v661_v37, %v602_v20 }
 0x1b0   : > { %v420_v39 = vpop.f32.mrf.mxu1 }
 0x1b1   : > { %468 = vst [vmem:[%s1119_s25 + $0x48] sm:$0xff] %v426_v38  ;;  %v421_v40 = vadd.f32 %v602_v20, %v420_v39 }
 0x1b3   : > { %467 = vst [vmem:[%s1119_s25 + $0x40] sm:$0xff] %v421_v40 }
 0x1b6   : > { %v664_v41 = vpop.f32.mrf.mxu1 }
 0x1b7   : > { %v436_v42 = vadd.f32 %v664_v41, %v602_v20 }
 0x1b8   : > { %v430_v43 = vpop.f32.mrf.mxu1 }
 0x1b9   : > { %470 = vst [vmem:[%s1119_s25 + $0x58] sm:$0xff] %v436_v42  ;;  %v431_v44 = vadd.f32 %v602_v20, %v430_v43 }
 0x1bb   : > { %469 = vst [vmem:[%s1119_s25 + $0x50] sm:$0xff] %v431_v44 }
 0x1be   : > { %v667_v45 = vpop.f32.mrf.mxu1 }
 0x1bf   : > { %v446_v46 = vadd.f32 %v667_v45, %v602_v20 }
 0x1c0   : > { %v440_v47 = vpop.f32.mrf.mxu1 }
 0x1c1   : > { %472 = vst [vmem:[%s1119_s25 + $0x68] sm:$0xff] %v446_v46  ;;  %v441_v48 = vadd.f32 %v602_v20, %v440_v47 }
 0x1c3   : > { %471 = vst [vmem:[%s1119_s25 + $0x60] sm:$0xff] %v441_v48 }
 0x1c6   : > { %v670_v49 = vpop.f32.mrf.mxu1 }
 0x1c7   : > { %v456_v50 = vadd.f32 %v670_v49, %v602_v20 }
 0x1c8   : > { %v450_v51 = vpop.f32.mrf.mxu1 }
 0x1c9   : > { %474 = vst [vmem:[%s1119_s25 + $0x78] sm:$0xff] %v456_v50  ;;  %v451_v52 = vadd.f32 %v602_v20, %v450_v51 }
 0x1cb   : > { %473 = vst [vmem:[%s1119_s25 + $0x70] sm:$0xff] %v451_v52 }
 0x1cc   : > { %837 = shalt.err (!%p834_p0)
}
 0x1cd   : > { %s838_s11 = scalar_lea.hbm %s1141_s7, 2048  ;;  %s842_s1 = scalar_lea.hbm %s1201_s3, 16384 }
 0x1ce   : > { %p839_p1 = scmp.ne.s32.totalorder %s1141_s7, %s838_s11  ;;  %p843_p10 = scmp.lt.s32.totalorder %s1141_s7, %s1201_s3 }
 0x1cf   : > { %p844_p11 = scmp.lt.s32.totalorder %s842_s1, %s838_s11 }
 0x1d0   : > { %p840_p4 = pnand %p839_p1, %p1230_p2 }
 0x1d1   : > { %p845_p5 = por %p844_p11, %p843_p10 }
 0x1d2   : > { %p841_p6 = pneg %p840_p4 }
 0x1d4   : > { %p846_p3 = pnand %p845_p5, %p841_p6 }
 0x1d6   : > { %849 = shalt.err (!%p846_p3)
}
 0x1d7   : > { %s932_s25 = smov 128   ;;  %s933_s27 = smov 8  }
 0x1d8   : > { %681 = dma.vmem_to_hbm [thread:$0]  (%p1230_p2), %s1143_s10, 2048, %s1141_s7, %s476_s15, %s932_s25, %s932_s25, %s933_s27  }
 0x1d9 PF: > { %s1231_s28 = sld [smem:[#allocation11_spill]]  ;;  %p698_p7 = scmp.ge.s32.totalorder %s924_s19, 2 }
 0x1da   : > { %s1232_s9 = sld [smem:[#allocation13_spill]] }
 0x1df   : > { %s506_s30 = sand.u32 1, %s1231_s28  }
 0x1e0   : > { %p1233_p8 = scmp.ne.s32.totalorder %s1232_s9, 0  ;;  %s507_s24 = scalar_lea.sflag [#allocation4], %s506_s30 }
 0x1e2   : > { %p692_p9 = pnand %p698_p7, %p1233_p8 }
 0x1e4   : > { %p693_p12 = pneg %p692_p9 }
 0x1e6   : > { %891 = dma.done.wait (%p693_p12), %s507_s24, 2048  }
 0x1e7   : > { %893 = vsyncadd (%p693_p12), %s507_s24, 4294965248  ;;  %s20_s19 = sadd.s32 1, %s924_s19   ;;  %s1234_s15 = sld [smem:[#allocation12_spill]] }
 0x1e8   : > { %p17_p13 = scmp.ge.s32.totalorder %s20_s19, 10   ;;  %s1235_s17 = sld [smem:[#allocation14_spill]] }
 0x1e9   : > { %s1236_s12 = smov %s900_s13  ;;  %s1237_s13 = smov %s904_s14 }
 0x1ea   : > { %s1238_s14 = smov %s1082_s29  ;;  %s1239_s16 = smov %s920_s18 }
 0x1eb   : > { %s1240_s18 = smov %s1246_s20  ;;  %19 = sbr.rel (!%p17_p13) target bundleno = 10 (0xa), region = 81 }
 0x1f0   :  { %512 = vsyncpa [#allocation3], 1 }
 0x1f1   :  { %514 = vsyncpa [#allocation3 + $0x1], 1 }
 0x1f2   :  { %515 = vsyncpa [#allocation6], 1 }
 0x1f3   :  { %516 = vsyncpa [#allocation4], 1 }
 0x1f4   :  { %518 = vsyncpa [#allocation4 + $0x1], 1 }

</bundles_post_ra>
